<compile_context>
chip_gen: v6e
topology: v6e:2x2x1
jax: 0.10.0
libtpu: 0.0.40
codegen_flags: <defaults>
</compile_context>

<pallas_src>
import jax
import jax.numpy as jnp
from jax import lax
from jax.experimental import pallas as pl
from jax.experimental.pallas import tpu as pltpu


def data_input_kernel(x_ref, w_ref, b_ref, o_ref, acc_ref):
    """Fused linear + running-max over the seq axis.

    x_ref:   (tB, tS, F)  input tile (bf16/f32, VMEM)
    w_ref:   (N, F)       Linear weight in PyTorch layout (bf16/f32, VMEM)
    b_ref:   (1, N)       Linear bias (f32, VMEM)
    o_ref:   (tB, N)      output tile (f32, VMEM) — same block across the seq grid axis
    acc_ref: (tB, N)      f32 running-max accumulator (VMEM scratch)
    """
    j = pl.program_id(1)  # seq-tile index (reduction axis)

    @pl.when(j == 0)
    def _init():
        acc_ref[...] = jnp.full(acc_ref.shape, -jnp.inf, dtype=acc_ref.dtype)

    tB, tS, F = x_ref.shape

    # Single MXU matmul with M = tB*tS (fills the systolic array) instead of
    # tB tiny (tS x F) matmuls. Contraction on the F axis of both operands, so
    # the weight stays in its native (N, F) layout — no wrapper transpose.
    x2d = x_ref[...].reshape(tB * tS, F)
    h = lax.dot_general(
        x2d, w_ref[...],
        dimension_numbers=(((1,), (1,)), ((), ())),
        preferred_element_type=jnp.float32,
    )                                                    # (tB*tS, N), f32

    tile_max = jnp.max(h.reshape(tB, tS, -1), axis=1)    # (tB, N)
    acc_ref[...] = jnp.maximum(acc_ref[...], tile_max)

    @pl.when(j == pl.num_programs(1) - 1)
    def _finalize():
        # Bias is constant over seq, so it is added once after the max.
        o_ref[...] = (acc_ref[...] + b_ref[...]).astype(o_ref.dtype)


def data_input_layer(x, weight, bias, *, block_b=None, block_s=None,
                     compute_dtype=jnp.bfloat16):
    """Equivalent of DataInputLayer(b, num_weights).forward(x).

    x:      (B, S, b)            float32
    weight: (num_weights, b)     float32  (PyTorch nn.Linear layout, NOT transposed)
    bias:   (num_weights,)       float32
    returns (B, num_weights)     float32
    """
    B, S, F = x.shape
    N, F_w = weight.shape
    assert F_w == F, "weight must be (num_weights, in_features)"

    # Tile selection: tB a multiple of 8 (sublane-dense stores), tS a multiple of 8,
    # sized so 2x double-buffered x tiles + the (tB*tS, N) f32 intermediate and the
    # (tB, N) accumulator stay comfortably inside v7x's 32 MiB scoped VMEM default.
    tB = block_b or next((t for t in (32, 16, 8) if B % t == 0), B)
    tS = block_s or next((t for t in (256, 128, 64, 32, 16, 8) if S % t == 0), S)
    assert B % tB == 0 and S % tS == 0

    # bf16 MXU inputs (full-rate on v5e/v6e/v7x, half the HBM bytes); f32 accumulate
    # happens inside the kernel via preferred_element_type. Bias stays f32.
    x_c = x.astype(compute_dtype)
    w_c = weight.astype(compute_dtype)
    b2d = bias.reshape(1, N).astype(jnp.float32)

    grid = (B // tB, S // tS)

    return pl.pallas_call(
        data_input_kernel,
        out_shape=jax.ShapeDtypeStruct((B, N), jnp.float32),
        grid_spec=pltpu.PrefetchScalarGridSpec(
            num_scalar_prefetch=0,
            grid=grid,
            in_specs=[
                pl.BlockSpec((tB, tS, F), lambda i, j: (i, j, 0)),
                pl.BlockSpec((N, F), lambda i, j: (0, 0)),
                pl.BlockSpec((1, N), lambda i, j: (0, 0)),
            ],
            # Same output block across the seq axis -> output stays resident while
            # the running max accumulates; written to HBM once at the last seq tile.
            out_specs=pl.BlockSpec((tB, N), lambda i, j: (i, 0)),
            scratch_shapes=[pltpu.VMEM((tB, N), jnp.float32)],
        ),
        compiler_params=pltpu.CompilerParams(
            dimension_semantics=("parallel", "arbitrary")),
    )(x_c, w_c, b2d)


if __name__ == "__main__":
    # Small shapes consistent with DataInputLayer(b=32, num_weights=128).
    # B=16, S=16 with 8x8 tiles -> grid=(2, 2), exercising both the parallel batch
    # axis and the running-max reduction over seq tiles.
    B, S, b_feat, num_weights = 16, 16, 32, 128

    key = jax.random.PRNGKey(0)
    kx, kw, kb = jax.random.split(key, 3)

    x = jax.random.normal(kx, (B, S, b_feat), dtype=jnp.float32)

    # Deterministic init mimicking PyTorch nn.Linear default: U(-1/sqrt(b), 1/sqrt(b)).
    bound = 1.0 / (b_feat ** 0.5)
    weight = jax.random.uniform(kw, (num_weights, b_feat), jnp.float32, -bound, bound)
    bias = jax.random.uniform(kb, (num_weights,), jnp.float32, -bound, bound)

    out = data_input_layer(x, weight, bias, block_b=8, block_s=8)
    out = jax.block_until_ready(out)

    # Pure-JAX f32 reference of the PyTorch forward.
    ref = jnp.max(jnp.einsum("bsf,nf->bsn", x, weight) + bias, axis=1)
    assert out.shape == (B, num_weights)
    # Tolerance covers bf16 MXU inputs with f32 accumulation.
    assert jnp.allclose(out, ref, atol=3e-2, rtol=3e-2), float(jnp.max(jnp.abs(out - ref)))

    print("KERNEL_OK")
</pallas_src>

<mosaic_0001>
module attributes {stable_mosaic.version = 11 : i64} {
  func.func @data_input_kernel(%arg0: i32, %arg1: i32, %arg2: memref<8x8x32xbf16, #tpu.memory_space<vmem>>, %arg3: memref<128x32xbf16, #tpu.memory_space<vmem>>, %arg4: memref<1x128xf32, #tpu.memory_space<vmem>>, %arg5: memref<8x128xf32, #tpu.memory_space<vmem>>, %arg6: memref<8x128xf32, #tpu.memory_space<vmem>>) attributes {dimension_semantics = [#tpu.dimension_semantics<parallel>, #tpu.dimension_semantics<arbitrary>], iteration_bounds = array<i64: 2, 2>, scalar_prefetch = 0 : i64, scratch_operands = 1 : i64, tpu.core_type = #tpu.core_type<tc>, window_params = [{transform_indices = @transform_0, window_bounds = array<i64: 8, 8, 32>}, {pipeline_mode = #tpu.pipeline_mode<synchronous>, transform_indices = @transform_1, window_bounds = array<i64: 128, 32>}, {pipeline_mode = #tpu.pipeline_mode<synchronous>, transform_indices = @transform_2, window_bounds = array<i64: 1, 128>}, {transform_indices = @transform_3, window_bounds = array<i64: 8, 128>}]} {
    %c0_i32 = arith.constant 0 : i32
    %0 = arith.cmpi eq, %arg1, %c0_i32 : i32
    %1 = arith.extui %0 : i1 to i32
    %c0_i32_0 = arith.constant 0 : i32
    %2 = arith.cmpi ne, %1, %c0_i32_0 : i32
    scf.if %2 {
      %cst_11 = arith.constant 0xFF800000 : f32
      %15 = vector.broadcast %cst_11 : f32 to vector<8x128xf32>
      %c0_12 = arith.constant 0 : index
      %c0_13 = arith.constant 0 : index
      %16 = vector.load %arg6[%c0_12, %c0_13] : memref<8x128xf32, #tpu.memory_space<vmem>>, vector<8x128xf32>
      tpu.vector_store %arg6[%c0_12, %c0_13], %15 {strides = array<i32>} : memref<8x128xf32, #tpu.memory_space<vmem>>, vector<8x128xf32>,
    } else {
    }
    %c0 = arith.constant 0 : index
    %c0_1 = arith.constant 0 : index
    %c0_2 = arith.constant 0 : index
    %3 = vector.load %arg2[%c0, %c0_1, %c0_2] : memref<8x8x32xbf16, #tpu.memory_space<vmem>>, vector<8x8x32xbf16>
    %4 = vector.shape_cast %3 : vector<8x8x32xbf16> to vector<64x32xbf16>
    %c0_3 = arith.constant 0 : index
    %c0_4 = arith.constant 0 : index
    %5 = vector.load %arg3[%c0_3, %c0_4] : memref<128x32xbf16, #tpu.memory_space<vmem>>, vector<128x32xbf16>
    %cst = arith.constant dense<0.000000e+00> : vector<64x128xf32>
    %6 = tpu.matmul %4, %5, %cst {dimension_numbers = #tpu.dot_dimension_numbers<[1], [1], [0], [0], [0, 0, 1, 0], [], []>} : vector<64x32xbf16>, vector<128x32xbf16>, vector<64x128xf32> -> vector<64x128xf32>
    %7 = vector.shape_cast %6 : vector<64x128xf32> to vector<8x8x128xf32>
    %cst_5 = arith.constant dense<0xFF800000> : vector<8x128xf32>
    %8 = vector.multi_reduction <maximumf>, %7, %cst_5 [1] : vector<8x8x128xf32> to vector<8x128xf32>
    %c0_6 = arith.constant 0 : index
    %c0_7 = arith.constant 0 : index
    %9 = vector.load %arg6[%c0_6, %c0_7] : memref<8x128xf32, #tpu.memory_space<vmem>>, vector<8x128xf32>
    %10 = arith.maximumf %9, %8 : vector<8x128xf32>
    %c0_8 = arith.constant 0 : index
    %c0_9 = arith.constant 0 : index
    %11 = vector.load %arg6[%c0_8, %c0_9] : memref<8x128xf32, #tpu.memory_space<vmem>>, vector<8x128xf32>
    tpu.vector_store %arg6[%c0_8, %c0_9], %10 {strides = array<i32>} : memref<8x128xf32, #tpu.memory_space<vmem>>, vector<8x128xf32>,
    %c1_i32 = arith.constant 1 : i32
    %12 = arith.cmpi eq, %arg1, %c1_i32 : i32
    %13 = arith.extui %12 : i1 to i32
    %c0_i32_10 = arith.constant 0 : i32
    %14 = arith.cmpi ne, %13, %c0_i32_10 : i32
    scf.if %14 {
      %c0_11 = arith.constant 0 : index
      %c0_12 = arith.constant 0 : index
      %15 = vector.load %arg6[%c0_11, %c0_12] : memref<8x128xf32, #tpu.memory_space<vmem>>, vector<8x128xf32>
      %c0_13 = arith.constant 0 : index
      %c0_14 = arith.constant 0 : index
      %16 = vector.load %arg4[%c0_13, %c0_14] : memref<1x128xf32, #tpu.memory_space<vmem>>, vector<1x128xf32>
      %17 = vector.broadcast %16 : vector<1x128xf32> to vector<8x128xf32>
      %18 = arith.addf %15, %17 : vector<8x128xf32>
      %c0_15 = arith.constant 0 : index
      %c0_16 = arith.constant 0 : index
      %19 = vector.load %arg5[%c0_15, %c0_16] : memref<8x128xf32, #tpu.memory_space<vmem>>, vector<8x128xf32>
      tpu.vector_store %arg5[%c0_15, %c0_16], %18 {strides = array<i32>} : memref<8x128xf32, #tpu.memory_space<vmem>>, vector<8x128xf32>,
    } else {
    }
    return
  }
  func.func @transform_0(%arg0: i32, %arg1: i32) -> (i32, i32, i32) {
    %c0_i32 = arith.constant 0 : i32
    %c0_i32_0 = arith.constant 0 : i32
    return %arg0, %arg1, %c0_i32 : i32, i32, i32
  }
  func.func @transform_1(%arg0: i32, %arg1: i32) -> (i32, i32) {
    %c0_i32 = arith.constant 0 : i32
    %c0_i32_0 = arith.constant 0 : i32
    %c0_i32_1 = arith.constant 0 : i32
    return %c0_i32, %c0_i32_0 : i32, i32
  }
  func.func @transform_2(%arg0: i32, %arg1: i32) -> (i32, i32) {
    %c0_i32 = arith.constant 0 : i32
    %c0_i32_0 = arith.constant 0 : i32
    %c0_i32_1 = arith.constant 0 : i32
    return %c0_i32, %c0_i32_0 : i32, i32
  }
  func.func @transform_3(%arg0: i32, %arg1: i32) -> (i32, i32) {
    %c0_i32 = arith.constant 0 : i32
    %c0_i32_0 = arith.constant 0 : i32
    return %arg0, %c0_i32 : i32, i32
  }
}

</mosaic_0001>

<bundles_post_ra>
// kernel: tpu_custom_call.1
= control target key start
LH: loop header
LB: loop body
LE: loop exit
PB: predicated region body
PF: predicated region fallthrough
CT: control target
= control target key end

     0   :  { %8 = vsyncpa [#allocation4], 0  ;;  %s1230_s0 = inlined_call_operand.hbm [shape: bf16[16,16,32], index: 0, kind: input, shape index: {}]   ;;  %s1231_s1 = inlined_call_operand.vmem [shape: bf16[128,32], index: 1, kind: input, shape index: {}]   ;;  %s1232_s2 = inlined_call_operand.vmem [shape: f32[1,128], index: 2, kind: input, shape index: {}]   ;;  %s1233_s3 = inlined_call_operand.hbm [shape: f32[16,128], index: 3, kind: output, shape index: {}]  }
   0x1   :  { %10 = vsyncpa [#allocation4 + $0x1], 0 }
   0x2   :  { %11 = vsyncpa [#allocation5], 0 }
   0x3   :  { %13 = vsyncpa [#allocation5 + $0x1], 0  ;;  %s980_s12 = smov 0   ;;  %s982_s13 = smov 0  }
   0x4   :  { %s984_s14 = smov 0   ;;  %s986_s15 = smov 0  }
   0x5   :  { %s988_s16 = smov 0   ;;  %s990_s17 = smov 0  }
   0x6   :  { %s992_s18 = smov 0   ;;  %s994_s19 = smov 0  }
   0x7   :  { %s996_s20 = smov 0   ;;  %s998_s21 = smov 0  }
   0x8   :  { %s1000_s22 = smov 0  }
   0x9 LB: > { %1237 = sst [smem:[#allocation9_spill]] %s932_s17  ;;  %s583_s23 = sadd.s32 4294967295, %s952_s22   ;;  %s952_s22 = sphi %s1000_s22, %s19_s22   ;;  %s948_s21 = sphi %s998_s21, %s1258_s21   ;;  %s944_s20 = sphi %s996_s20, %s1257_s20   ;;  %s940_s19 = sphi %s994_s19, %s1256_s19   ;;  %s936_s18 = sphi %s992_s18, %s1255_s18   ;;  %s932_s17 = sphi %s990_s17, %s1247_s17   ;;  %s928_s16 = sphi %s988_s16, %s1254_s16   ;;  %s924_s15 = sphi %s986_s15, %s1253_s15   ;;  %s920_s14 = sphi %s984_s14, %s1252_s14   ;;  %s916_s13 = sphi %s982_s13, %s1251_s13   ;;  %s912_s12 = sphi %s980_s12, %s1250_s12  }
   0xa   : > { %s584_s24 = sadd.s32 4294967294, %s952_s22   ;;  %s28_s25 = sadd.s32 1, %s944_s20 }
   0xb   : > { %s31_s26 = sadd.s32 1, %s948_s21  ;;  %p29_p0 = scmp.ge.s32.totalorder %s28_s25, 2 }
   0xc   : > { %s40_s27 = sadd.s32 1, %s932_s17  ;;  %p47_p1 = scmp.ne.s32.totalorder %s932_s17, %s928_s16 }
   0xd   : > { %p48_p2 = scmp.eq.s32.totalorder %s952_s22, 0  ;;  %s1260_s25 = smov (%p29_p0, %s28_s25), 0 }
   0xe   : > { %1238 = sst [smem:[#allocation10_spill]] %s1260_s25  ;;  %s1262_s26 = smov (!%p29_p0, %s31_s26), %s948_s21 }
   0xf   : > { %s36_s28 = ssub.s32 %s944_s20, %s1260_s25  ;;  %p1046_p3 = por %p48_p2, %p47_p1 }
  0x10   : > { %p33_p4 = scmp.ge.s32.totalorder %s1262_s26, 2  ;;  %p53_p5 = scmp.ne.s32.totalorder %s928_s16, %s924_s15 }
  0x11   : > { %p54_p6 = scmp.eq.s32.totalorder %s583_s23, 0  ;;  %s108_s30 = sadd.s32 1, %s920_s14 }
  0x12   : > { %s1264_s26 = smov (%p33_p4, %s1262_s26), 0  ;;  %p118_p8 = scmp.ne.s32.totalorder %s920_s14, %s916_s13 }
  0x13   : > { %1240 = sst [smem:[#allocation11_spill]] %s1264_s26  ;;  %p1054_p7 = por %p54_p6, %p53_p5 }
  0x14   : > { %s35_s5 = ssub.s32 %s948_s21, %s1264_s26  ;;  %p119_p9 = scmp.eq.s32.totalorder %s583_s23, 3 }
  0x15   : > { %s37_s6 = sor.u32 %s36_s28, %s35_s5  ;;  %p106_p10 = scmp.eq.s32.totalorder %s35_s5, 0 }
  0x16   : > { %p38_p11 = scmp.eq.s32.totalorder %s37_s6, 0  ;;  %p1062_p12 = por %p119_p9, %p118_p8 }
  0x17   : > { %s1067_s8 = scalar_select %p106_p10, %s920_s14, %s108_s30  }
  0x18   : > { %s1070_s9 = scalar_select %p38_p11, %s932_s17, %s40_s27  }
  0x19   : > { %p124_p13 = scmp.ne.s32.totalorder %s916_s13, %s912_s12  ;;  %p125_p0 = scmp.eq.s32.totalorder %s584_s24, 3 }
  0x1a   : > { %1243 = sst [smem:[#allocation12_spill]] %s1070_s9  ;;  %p698_p1 = scmp.lt.s32.totalorder %s952_s22, 4 }
  0x1b   : > { %p1075_p2 = por %p125_p0, %p124_p13  ;;  %s151_s11 = sand.u32 1, %s932_s17  }
  0x1c   : > { %s587_s15 = sshll.u32 %s151_s11, 5  ;;  %s617_s23 = sshll.u32 %s948_s21, 4 }
  0x1d   : > { %s161_s28 = sadd.s32 %s944_s20, %s617_s23  ;;  %s155_s5 = scalar_lea.vmem [#allocation3], %s587_s15 }
  0x1e   : > { %s164_s6 = sshll.u32 %s155_s5, 4  ;;  %s590_s26 = sshll.u32 %s161_s28, 6  ;;  %s165_s6 = int_to_ptr.vmem [resolvable:$true] %s164_s6 }
  0x1f   : > { %s163_s27 = scalar_lea.hbm %s1230_s0, %s590_s26  ;;  %p1087_p4 = pnand %p698_p1, %p1046_p3 }
  0x20   : > { %s152_s9 = scalar_lea.sflag [#allocation4], %s151_s11  ;;  %s817_s17 = scalar_lea.vmem %s165_s6, 512 }
  0x21   : > { %p806_p5 = pneg %p1087_p4  ;;  %p818_p6 = scmp.ne.s32.totalorder %s165_s6, %s817_s17 }
  0x22   : > { %s954_s15 = smov [#allocation3]  }
  0x23   : > { %p820_p8 = pnand %p818_p6, %p806_p5  ;;  %s822_s23 = sshll.u32 %s954_s15, 4  ;;  %s823_s23 = int_to_ptr.vmem [resolvable:$false] %s822_s23 }
  0x24   : > { %s824_s28 = scalar_lea.vmem %s823_s23, 1024  ;;  %p825_p10 = scmp.lt.s32.totalorder %s165_s6, %s823_s23 }
  0x25   : > { %p821_p9 = pneg %p820_p8  ;;  %p826_p11 = scmp.lt.s32.totalorder %s824_s28, %s817_s17 }
  0x27   : > { %p827_p13 = por %p826_p11, %p825_p10 }
  0x29   : > { %p828_p0 = pnand %p827_p13, %p821_p9 }
  0x2b   : > { %831 = shalt.err (!%p828_p0)
}
  0x2c   : > { %s955_s25 = smov 128   ;;  %s956_s26 = smov 64  }
  0x2d   : > { %s957_s29 = smov 4   ;;  %p591_p3 = scmp.ge.s32.totalorder %s952_s22, 1 }
  0x2e   : > { %693 = dma.hbm_to_vmem [thread:$0]  (!%p1087_p4), %s163_s27, 512, %s165_s6, %s152_s9, %s955_s25, %s956_s26, %s957_s29  }
  0x2f   : > { %p172_p1 = scmp.lt.s32.totalorder %s952_s22, 5 }
  0x31   : > { %p173_p5 = pnand %p591_p3, %p172_p1 }
  0x32   : > { %s178_s11 = sand.u32 (!%p173_p5), 1, %s928_s16  }
  0x33   : > { %176 = sbr.rel (%p173_p5) target bundleno = 385 (0x181), region = 32  ;;  %s592_s5 = sshll.u32 (!%p173_p5), %s178_s11, 5 }
  0x34   : > { %s179_s17 = scalar_lea.sflag (!%p173_p5), [#allocation4], %s178_s11  ;;  %s1098_s30 = scalar_lea.vmem (!%p173_p5), [#allocation3], %s592_s5 }
  0x38   : > { %903 = dma.done.wait (%p1054_p7), %s179_s17, 512  }
  0x39   : > { %905 = vsyncadd (%p1054_p7), %s179_s17, 4294966784  ;;  %s202_s24 = sand.u32 1, %s916_s13   ;;  %p594_p4 = scmp.ne.s32.totalorder %s936_s18, 0 }
  0x3a   : > { %s1107_s9 = sshll.u32 %s202_s24, 3 }
  0x3b   : > { %s204_s6 = scalar_lea.vmem [#allocation6], %s1107_s9  ;;  %210 = sbr.rel (%p594_p4) target bundleno = 66 (0x42), region = 40 }
  0x40   : > { %v958_v0 = vmov -inf  }
  0x41   : > { %211 = vst [vmem:[#allocation2] sm:$0xff] %v958_v0 }
  0x42 PF: > { %v792_v1 = vld [vmem:[%s1231_s1 + $0x38] sm:$0xff]   ;;  %vm296_vm0 = vcmask 261120   ;;  %v793_v2 = vld [vmem:[%s1231_s1 + $0x30] sm:$0xff]   ;;  %v794_v4 = vld [vmem:[%s1231_s1 + $0x28] sm:$0xff]   ;;  %vm455_vm1 = vcmask 1041409   ;;  %vm457_vm2 = vcmask 1042434  }
  0x43   : > { %670 = vmatprep.subr.msk.bf16.mxu0 %vm296_vm0, %v792_v1  ;;  %671 = vmatprep.subr.msk.bf16.mxu1 %vm296_vm0, %v792_v1  ;;  %v331_v3 = vsel %vm296_vm0, %v792_v1, 0  ;;  %v328_v5 = vsel %vm296_vm0, %v793_v2, 0  ;;  %v800_v6 = vld [vmem:[%s1098_s30] sm:$0xff]   ;;  %v801_v7 = vld [vmem:[%s1098_s30 + $0x10] sm:$0xff]   ;;  %v325_v8 = vsel %vm296_vm0, %v794_v4, 0  ;;  %v795_v9 = vld [vmem:[%s1231_s1 + $0x20] sm:$0xff]  }
  0x44   : > { %631 = vmatpush3.bf16.xpose.msra.mxu0 %v331_v3  ;;  %662 = vmatpush3.bf16.xpose.msra.mxu1 %v331_v3  ;;  %v322_v10 = vsel %vm296_vm0, %v795_v9, 0  ;;  %v796_v11 = vld [vmem:[%s1231_s1 + $0x18] sm:$0xff]   ;;  %v797_v13 = vld [vmem:[%s1231_s1 + $0x10] sm:$0xff]   ;;  %v798_v15 = vld [vmem:[%s1231_s1 + $0x8] sm:$0xff]   ;;  %vm459_vm3 = vcmask 1043459   ;;  %vm461_vm4 = vcmask 1044484  }
  0x45   : > { %672 = vmatprep.subr.msk.bf16.mxu0 %vm296_vm0, %v793_v2  ;;  %673 = vmatprep.subr.msk.bf16.mxu1 %vm296_vm0, %v793_v2  ;;  %v319_v12 = vsel %vm296_vm0, %v796_v11, 0  ;;  %v316_v14 = vsel %vm296_vm0, %v797_v13, 0  ;;  %v313_v16 = vsel %vm296_vm0, %v798_v15, 0  ;;  %v799_v17 = vld [vmem:[%s1231_s1] sm:$0xff]   ;;  %v802_v19 = vld [vmem:[%s1098_s30 + $0x8] sm:$0xff]   ;;  %vm463_vm5 = vcmask 1045509  }
  0x46   : > { %646 = vmatprep.mubr.msk.bf16.mxu0 %vm296_vm0, %v800_v6  ;;  %650 = vmatprep.mubr.msk.bf16.mxu1 %vm296_vm0, %v801_v7  ;;  %v310_v18 = vsel %vm296_vm0, %v799_v17, 0  ;;  %v803_v20 = vld [vmem:[%s1098_s30 + $0x18] sm:$0xff]   ;;  %vm465_vm6 = vcmask 1046534   ;;  %vm467_vm7 = vcmask 1047559   ;;  %p611_p7 = scmp.ne.s32.totalorder %s936_s18, 1 }
  0x4c   : > { %633 = vmatpush3.bf16.xpose.msra.mxu0 %v328_v5  ;;  %663 = vmatpush3.bf16.xpose.msra.mxu1 %v328_v5 }
  0x4d   : > { %674 = vmatprep.subr.msk.bf16.mxu0 %vm296_vm0, %v794_v4  ;;  %675 = vmatprep.subr.msk.bf16.mxu1 %vm296_vm0, %v794_v4 }
  0x54   : > { %635 = vmatpush3.bf16.xpose.msra.mxu0 %v325_v8  ;;  %664 = vmatpush3.bf16.xpose.msra.mxu1 %v325_v8 }
  0x55   : > { %676 = vmatprep.subr.msk.bf16.mxu0 %vm296_vm0, %v795_v9  ;;  %677 = vmatprep.subr.msk.bf16.mxu1 %vm296_vm0, %v795_v9 }
  0x5c   : > { %637 = vmatpush3.bf16.xpose.msra.mxu0 %v322_v10  ;;  %665 = vmatpush3.bf16.xpose.msra.mxu1 %v322_v10 }
  0x5d   : > { %678 = vmatprep.subr.msk.bf16.mxu0 %vm296_vm0, %v796_v11  ;;  %679 = vmatprep.subr.msk.bf16.mxu1 %vm296_vm0, %v796_v11 }
  0x64   : > { %639 = vmatpush3.bf16.xpose.msra.mxu0 %v319_v12  ;;  %666 = vmatpush3.bf16.xpose.msra.mxu1 %v319_v12 }
  0x65   : > { %680 = vmatprep.subr.msk.bf16.mxu0 %vm296_vm0, %v797_v13  ;;  %681 = vmatprep.subr.msk.bf16.mxu1 %vm296_vm0, %v797_v13 }
  0x6c   : > { %641 = vmatpush3.bf16.xpose.msra.mxu0 %v316_v14  ;;  %667 = vmatpush3.bf16.xpose.msra.mxu1 %v316_v14 }
  0x6d   : > { %682 = vmatprep.subr.msk.bf16.mxu0 %vm296_vm0, %v798_v15  ;;  %683 = vmatprep.subr.msk.bf16.mxu1 %vm296_vm0, %v798_v15 }
  0x74   : > { %643 = vmatpush3.bf16.xpose.msra.mxu0 %v313_v16  ;;  %668 = vmatpush3.bf16.xpose.msra.mxu1 %v313_v16 }
  0x75   : > { %684 = vmatprep.subr.msk.bf16.mxu0 %vm296_vm0, %v799_v17  ;;  %685 = vmatprep.subr.msk.bf16.mxu1 %vm296_vm0, %v799_v17  ;;  %v446_v17 = vld [vmem:[#allocation2] sm:$0xff] }
  0x7c   : > { %645 = vmatpush3.bf16.xpose.msra.mxu0 %v310_v18  ;;  %669 = vmatpush3.bf16.xpose.msra.mxu1 %v310_v18 }
  0x83   : > { %647 = vmatmul.mubr.msk.bf16.vlgmr.msra.gmra.mxu0 %vm296_vm0, %v802_v19  ;;  %651 = vmatmul.mubr.msk.bf16.vlgmr.msra.gmra.mxu1 %vm296_vm0, %v803_v20 }
 0x143   : > { %v648_v21 = vpop.f32.mrf.mxu0  ;;  %v652_v22 = vpop.f32.mrf.mxu1 }
 0x144   : > { %v410_v23 = vrot.slane %v648_v21, 4  ;;  %v434_v27 = vrot.slane %v652_v22, 4 }
 0x145   : > { %v367_v24 = vpop.f32.mrf.mxu0  ;;  %v383_v25 = vpop.f32.mrf.mxu1 }
 0x146   : > { %v411_v26 = vmax.f32 %v648_v21, %v410_v23  ;;  %v398_v28 = vrot.slane %v367_v24, 4  ;;  %v422_v29 = vrot.slane %v383_v25, 4  ;;  %v435_v39 = vmax.f32 %v652_v22, %v434_v27 }
 0x147   : > { %v649_v30 = vpop.f32.mrf.mxu0  ;;  %v653_v31 = vpop.f32.mrf.mxu1 }
 0x148   : > { %v399_v32 = vmax.f32 %v367_v24, %v398_v28  ;;  %v423_v33 = vmax.f32 %v383_v25, %v422_v29  ;;  %v416_v34 = vrot.slane %v649_v30, 4  ;;  %v440_v35 = vrot.slane %v653_v31, 4 }
 0x149   : > { %v370_v36 = vpop.f32.mrf.mxu0  ;;  %v386_v37 = vpop.f32.mrf.mxu1  ;;  %v412_v38 = vrot.slane %v411_v26, 2  ;;  %v436_v51 = vrot.slane %v435_v39, 2 }
 0x14a   : > { %v400_v40 = vrot.slane %v399_v32, 2  ;;  %v417_v41 = vmax.f32 %v649_v30, %v416_v34  ;;  %v441_v42 = vmax.f32 %v653_v31, %v440_v35  ;;  %v404_v43 = vrot.slane %v370_v36, 4 }
 0x14b   : > { %v428_v44 = vrot.slane %v386_v37, 4  ;;  %v424_v45 = vrot.slane %v423_v33, 2  ;;  %v413_v50 = vmax.f32 %v411_v26, %v412_v38  ;;  %v437_v61 = vmax.f32 %v435_v39, %v436_v51 }
 0x14c   : > { %v401_v46 = vmax.f32 %v399_v32, %v400_v40  ;;  %v418_v47 = vrot.slane %v417_v41, 2  ;;  %v405_v48 = vmax.f32 %v370_v36, %v404_v43  ;;  %v442_v53 = vrot.slane %v441_v42, 2 }
 0x14d   : > { %v429_v49 = vmax.f32 %v386_v37, %v428_v44  ;;  %v425_v56 = vmax.f32 %v423_v33, %v424_v45  ;;  %v414_v60 = vrot.slane %v413_v50, 1  ;;  %v438_v6 = vrot.slane %v437_v61, 1 }
 0x14e   : > { %v419_v52 = vmax.f32 %v417_v41, %v418_v47  ;;  %v406_v54 = vrot.slane %v405_v48, 2  ;;  %v402_v57 = vrot.slane %v401_v46, 1  ;;  %v443_v63 = vmax.f32 %v441_v42, %v442_v53 }
 0x14f   : > { %v430_v55 = vrot.slane %v429_v49, 2  ;;  %v426_v1 = vrot.slane %v425_v56, 1  ;;  %v415_v5 = vmax.f32 %v413_v50, %v414_v60  ;;  %v439_v14 = vmax.f32 %v437_v61, %v438_v6 }
 0x150   : > { %v407_v58 = vmax.f32 %v405_v48, %v406_v54  ;;  %v420_v62 = vrot.slane %v419_v52, 1  ;;  %v403_v2 = vmax.f32 %v401_v46, %v402_v57  ;;  %v444_v8 = vrot.slane %v443_v63, 1 }
 0x151   : > { %v431_v59 = vmax.f32 %v429_v49, %v430_v55  ;;  %v427_v10 = vmax.f32 %v425_v56, %v426_v1 }
 0x152   : > { %v408_v0 = vrot.slane %v407_v58, 1  ;;  %v421_v7 = vmax.f32 %v419_v52, %v420_v62  ;;  %v445_v16 = vmax.f32 %v443_v63, %v444_v8 }
 0x153   : > { %v432_v4 = vrot.slane %v431_v59, 1 }
 0x154   : > { %v409_v3 = vmax.f32 %v407_v58, %v408_v0 }
 0x155   : > { %v433_v12 = vmax.f32 %v431_v59, %v432_v4 }
 0x156   : > { %v456_v9 = vsel %vm455_vm1, %v409_v3, %v403_v2 }
 0x157   : > { %v458_v11 = vsel %vm457_vm2, %v415_v5, %v456_v9 }
 0x158   : > { %v460_v13 = vsel %vm459_vm3, %v421_v7, %v458_v11 }
 0x159   : > { %v462_v15 = vsel %vm461_vm4, %v427_v10, %v460_v13 }
 0x15a   : > { %v464_v18 = vsel %vm463_vm5, %v433_v12, %v462_v15 }
 0x15b   : > { %v466_v19 = vsel %vm465_vm6, %v439_v14, %v464_v18  ;;  %475 = sbr.rel (%p611_p7) target bundleno = 362 (0x16a), region = 44 }
 0x15c   : > { %v468_v20 = vsel %vm467_vm7, %v445_v16, %v466_v19 }
 0x15d   : > { %v470_v21 = vmax.f32 %v446_v17, %v468_v20 }
 0x15f   : > { %471 = vst [vmem:[#allocation2] sm:$0xff] %v470_v21 }
 0x160   : > { %v612_v23 = vld [vmem:[%s1232_s2] ss:$0 sm:$0xff] }
 0x166   : > { %v476_v22 = vld [vmem:[#allocation2] sm:$0xff] }
 0x167   : > { %v484_v24 = vadd.f32 %v612_v23, %v476_v22 }
 0x169   : > { %485 = vst [vmem:[%s204_s6] sm:$0xff] %v484_v24 }
 0x16a PF: > { %s614_s26 = sshll.u32 %s940_s19, 7  ;;  %s500_s5 = sshll.u32 %s204_s6, 4  ;;  %s501_s5 = int_to_ptr.vmem [resolvable:$true] %s500_s5 }
 0x16b   : > { %s498_s18 = scalar_lea.hbm %s1233_s3, %s614_s26  ;;  %s487_s17 = scalar_lea.sflag [#allocation5], %s202_s24 }
 0x16c   : > { %s832_s27 = scalar_lea.vmem %s501_s5, 128  ;;  %s959_s15 = smov [#allocation6]  }
 0x16d   : > { %p833_p6 = scmp.ne.s32.totalorder %s501_s5, %s832_s27  ;;  %s836_s4 = sshll.u32 %s959_s15, 4  ;;  %s837_s4 = int_to_ptr.vmem [resolvable:$false] %s836_s4 }
 0x16e   : > { %s838_s23 = scalar_lea.vmem %s837_s4, 256  ;;  %p839_p10 = scmp.lt.s32.totalorder %s501_s5, %s837_s4 }
 0x16f   : > { %p834_p8 = pnand %p833_p6, %p1062_p12  ;;  %p840_p11 = scmp.lt.s32.totalorder %s838_s23, %s832_s27 }
 0x171   : > { %p835_p9 = pneg %p834_p8  ;;  %p841_p13 = por %p840_p11, %p839_p10 }
 0x173   : > { %p842_p0 = pnand %p841_p13, %p835_p9 }
 0x175   : > { %845 = shalt.err (!%p842_p0)
}
 0x176   : > { %s846_s19 = scalar_lea.hbm %s498_s18, 128  ;;  %s850_s6 = scalar_lea.hbm %s1233_s3, 256 }
 0x177   : > { %p847_p3 = scmp.ne.s32.totalorder %s498_s18, %s846_s19  ;;  %p851_p4 = scmp.lt.s32.totalorder %s498_s18, %s1233_s3 }
 0x178   : > { %p852_p7 = scmp.lt.s32.totalorder %s850_s6, %s846_s19 }
 0x179   : > { %p848_p1 = pnand %p847_p3, %p1062_p12 }
 0x17a   : > { %p853_p6 = por %p852_p7, %p851_p4 }
 0x17b   : > { %p849_p5 = pneg %p848_p1 }
 0x17d   : > { %p854_p8 = pnand %p853_p6, %p849_p5 }
 0x17f   : > { %857 = shalt.err (!%p854_p8)
}
 0x180   : > { %688 = dma.vmem_to_hbm [thread:$0]  (%p1062_p12), %s501_s5, 128, %s498_s18, %s487_s17  }
 0x181 PF: > { %p699_p9 = scmp.ge.s32.totalorder %s952_s22, 2  ;;  %s512_s25 = sand.u32 1, %s912_s12  }
 0x182   : > { %s513_s26 = scalar_lea.sflag [#allocation5], %s512_s25 }
 0x183   : > { %p695_p10 = pnand %p699_p9, %p1075_p2 }
 0x185   : > { %p696_p11 = pneg %p695_p10 }
 0x187   : > { %907 = dma.done.wait (%p696_p11), %s513_s26, 128  }
 0x188   : > { %909 = vsyncadd (%p696_p11), %s513_s26, 4294967168  ;;  %s19_s22 = sadd.s32 1, %s952_s22   ;;  %s1246_s7 = sld [smem:[#allocation9_spill]] }
 0x189   : > { %p16_p13 = scmp.ge.s32.totalorder %s19_s22, 6   ;;  %s1247_s17 = sld [smem:[#allocation12_spill]] }
 0x18a   : > { %s1248_s29 = sld [smem:[#allocation10_spill]]  ;;  %s1250_s12 = smov %s916_s13 }
 0x18b   : > { %s1249_s11 = sld [smem:[#allocation11_spill]]  ;;  %s1251_s13 = smov %s920_s14 }
 0x18c   : > { %s1252_s14 = smov %s1067_s8  ;;  %s1253_s15 = smov %s928_s16 }
 0x18d   : > { %s1255_s18 = smov %s944_s20  ;;  %s1256_s19 = smov %s948_s21 }
 0x18e   : > { %s1254_s16 = smov %s1246_s7  ;;  %18 = sbr.rel (!%p16_p13) target bundleno = 9 (0x9), region = 85 }
 0x190   : > { %s1257_s20 = smov %s1248_s29 }
 0x191   : > { %s1258_s21 = smov %s1249_s11 }
 0x193   :  { %518 = vsyncpa [#allocation4], 1 }
 0x194   :  { %520 = vsyncpa [#allocation4 + $0x1], 1 }
 0x195   :  { %521 = vsyncpa [#allocation5], 1 }
 0x196   :  { %523 = vsyncpa [#allocation5 + $0x1], 1 }

</bundles_post_ra>
